<compile_context>
chip_gen: v7x
topology: tpu7x:2x2x1
jax: 0.10.0
libtpu: 0.0.40
codegen_flags: <defaults>
</compile_context>

<pallas_src>
import jax
import jax.numpy as jnp
from jax.experimental import pallas as pl
from jax.experimental.pallas import tpu as pltpu

# TODO(synk): `eps` is an undefined module-level global in the PyTorch source;
# fixed deterministically to 0.1 here. The Gaussian noise of torch.randn is
# precomputed in JAX (PRNGKey-derived) and passed in for determinism.
EPS = 0.1

HID1 = 256   # fc1 output dim
HID2 = 64    # fc2 output dim (padded to 128 inside the wrapper)

_LANE = 128
_SUBLANE = 8


def _round_up(n, m):
    return ((n + m - 1) // m) * m


def _pad2(a, shape):
    return jnp.pad(a, ((0, shape[0] - a.shape[0]), (0, shape[1] - a.shape[1])))


def cstg_kernel(x_ref, gate_w_ref, noise_ref,
                w1_ref, b1_ref, w2_ref, b2_ref, w3_ref, b3_ref,
                out_ref):
    f32 = jnp.float32

    # Hypernetwork gate: clamp(w + eps*noise, 0, 1), broadcast over the batch
    # sublanes. Computed in f32 on the resident (1, F) params.
    gate = jnp.clip(gate_w_ref[...] + EPS * noise_ref[...], 0.0, 1.0)       # (1, Fp)
    xg = (x_ref[...].astype(f32) * gate).astype(x_ref.dtype)                # (TB, Fp)

    # PredictionNetwork: fc1 -> relu -> fc2 -> relu -> fc3 (MXU matmuls,
    # f32 accumulation; epilogue math in f32).
    h1 = jnp.dot(xg, w1_ref[...], preferred_element_type=f32) + b1_ref[...]
    h1 = jnp.maximum(h1, 0.0).astype(w2_ref.dtype)
    h2 = jnp.dot(h1, w2_ref[...], preferred_element_type=f32) + b2_ref[...]
    h2 = jnp.maximum(h2, 0.0).astype(w3_ref.dtype)
    y = jnp.dot(h2, w3_ref[...], preferred_element_type=f32) + b3_ref[...]

    # Lane-dense (multiple-of-128) store; real out_dim sliced out in the wrapper.
    out_ref[...] = y.astype(out_ref.dtype)


def cstg_forward(x, gate_w, noise, w1, b1, w2, b2, w3, b3,
                 *, tb=None, compute_dtype=jnp.bfloat16):
    B, F = x.shape
    OUT = w3.shape[1]
    H1 = w1.shape[1]
    H2 = w2.shape[1]

    # Padded (lane-dense) dims.
    Fp = _round_up(F, _LANE)
    H1p = _round_up(H1, _LANE)
    H2p = _round_up(H2, _LANE)
    OUTp = _round_up(OUT, _LANE)

    # Batch tile: multiple of 8 sublanes; 512 rows reaches ~85% of HBM roofline
    # and keeps the (weights + 2x double-buffered x tile + 2x out tile) VMEM
    # footprint at ~1 MiB, far under v7x's 64 MiB budget.
    if tb is None:
        tb = min(512, _round_up(B, _SUBLANE))
    TB = _round_up(tb, _SUBLANE)
    Bp = _round_up(max(B, TB), TB)

    # Pad + cast operands (zero padding is exact: zero rows/cols contribute 0).
    xp = _pad2(x, (Bp, Fp)).astype(compute_dtype)
    gwp = _pad2(gate_w, (1, Fp)).astype(jnp.float32)
    nzp = _pad2(noise, (1, Fp)).astype(jnp.float32)
    w1p = _pad2(w1, (Fp, H1p)).astype(compute_dtype)
    b1p = _pad2(b1, (1, H1p)).astype(jnp.float32)
    w2p = _pad2(w2, (H1p, H2p)).astype(compute_dtype)
    b2p = _pad2(b2, (1, H2p)).astype(jnp.float32)
    w3p = _pad2(w3, (H2p, OUTp)).astype(compute_dtype)
    b3p = _pad2(b3, (1, OUTp)).astype(jnp.float32)

    resident = lambda i: (0, 0)   # weights / gate params: same block every step

    out = pl.pallas_call(
        cstg_kernel,
        out_shape=jax.ShapeDtypeStruct((Bp, OUTp), jnp.float32),
        grid=(Bp // TB,),
        in_specs=[
            pl.BlockSpec((TB, Fp), lambda i: (i, 0)),   # x: tiled over batch
            pl.BlockSpec((1, Fp), resident),            # gate weights
            pl.BlockSpec((1, Fp), resident),            # gate noise
            pl.BlockSpec((Fp, H1p), resident),          # W1
            pl.BlockSpec((1, H1p), resident),           # b1
            pl.BlockSpec((H1p, H2p), resident),         # W2
            pl.BlockSpec((1, H2p), resident),           # b2
            pl.BlockSpec((H2p, OUTp), resident),        # W3
            pl.BlockSpec((1, OUTp), resident),          # b3
        ],
        out_specs=pl.BlockSpec((TB, OUTp), lambda i: (i, 0)),
        compiler_params=pltpu.CompilerParams(
            dimension_semantics=("parallel",)),
    )(xp, gwp, nzp, w1p, b1p, w2p, b2p, w3p, b3p)

    return out[:B, :OUT]


def init_params(key, feature_dim, output_dim):
    """Deterministic init mimicking nn.Linear defaults (uniform +/- 1/sqrt(fan_in))."""
    ks = jax.random.split(key, 6)

    def lin(kw, kb, fan_in, fan_out):
        bound = 1.0 / jnp.sqrt(jnp.float32(fan_in))
        w = jax.random.uniform(kw, (fan_in, fan_out), jnp.float32, -bound, bound)
        b = jax.random.uniform(kb, (1, fan_out), jnp.float32, -bound, bound)
        return w, b

    w1, b1 = lin(ks[0], ks[1], feature_dim, HID1)
    w2, b2 = lin(ks[2], ks[3], HID1, HID2)
    w3, b3 = lin(ks[4], ks[5], HID2, output_dim)
    gate_w = jnp.ones((1, feature_dim), jnp.float32)  # Hypernetwork: torch.ones(feature_dim)
    return gate_w, w1, b1, w2, b2, w3, b3


def reference_forward(x, gate_w, noise, w1, b1, w2, b2, w3, b3,
                      compute_dtype=jnp.bfloat16):
    """Pure-JAX reference mirroring the kernel's operand quantization."""
    f32 = jnp.float32
    q = lambda a: a.astype(compute_dtype).astype(f32)
    gate = jnp.clip(gate_w + EPS * noise, 0.0, 1.0)
    xg = q(q(x) * gate)
    h1 = q(jnp.maximum(xg @ q(w1) + b1, 0.0))
    h2 = q(jnp.maximum(h1 @ q(w2) + b2, 0.0))
    return h2 @ q(w3) + b3


if __name__ == "__main__":
    batch, feature_dim, output_dim = 24, 32, 8   # small; tb=8 -> grid of 3 steps

    key = jax.random.PRNGKey(0)
    k_x, k_noise, k_params = jax.random.split(key, 3)

    x = jax.random.normal(k_x, (batch, feature_dim), jnp.float32)
    noise = jax.random.normal(k_noise, (1, feature_dim), jnp.float32)
    gate_w, w1, b1, w2, b2, w3, b3 = init_params(k_params, feature_dim, output_dim)

    out = cstg_forward(x, gate_w, noise, w1, b1, w2, b2, w3, b3,
                       tb=8, compute_dtype=jnp.bfloat16)
    out = jax.block_until_ready(out)

    ref = reference_forward(x, gate_w, noise, w1, b1, w2, b2, w3, b3,
                            compute_dtype=jnp.bfloat16)
    assert out.shape == (batch, output_dim)
    assert jnp.allclose(out, ref, atol=1e-2, rtol=1e-2), "mismatch vs pure-JAX reference"

    print("KERNEL_OK")
</pallas_src>

<mosaic_0001>
module attributes {stable_mosaic.version = 11 : i64} {
  func.func @cstg_kernel(%arg0: i32, %arg1: memref<8x128xbf16, #tpu.memory_space<vmem>>, %arg2: memref<1x128xf32, #tpu.memory_space<vmem>>, %arg3: memref<1x128xf32, #tpu.memory_space<vmem>>, %arg4: memref<128x256xbf16, #tpu.memory_space<vmem>>, %arg5: memref<1x256xf32, #tpu.memory_space<vmem>>, %arg6: memref<256x128xbf16, #tpu.memory_space<vmem>>, %arg7: memref<1x128xf32, #tpu.memory_space<vmem>>, %arg8: memref<128x128xbf16, #tpu.memory_space<vmem>>, %arg9: memref<1x128xf32, #tpu.memory_space<vmem>>, %arg10: memref<8x128xf32, #tpu.memory_space<vmem>>) attributes {dimension_semantics = [#tpu.dimension_semantics<parallel>], iteration_bounds = array<i64: 3>, scalar_prefetch = 0 : i64, scratch_operands = 0 : i64, tpu.core_type = #tpu.core_type<tc>, window_params = [{transform_indices = @transform_0, window_bounds = array<i64: 8, 128>}, {pipeline_mode = #tpu.pipeline_mode<synchronous>, transform_indices = @transform_1, window_bounds = array<i64: 1, 128>}, {pipeline_mode = #tpu.pipeline_mode<synchronous>, transform_indices = @transform_2, window_bounds = array<i64: 1, 128>}, {pipeline_mode = #tpu.pipeline_mode<synchronous>, transform_indices = @transform_3, window_bounds = array<i64: 128, 256>}, {pipeline_mode = #tpu.pipeline_mode<synchronous>, transform_indices = @transform_4, window_bounds = array<i64: 1, 256>}, {pipeline_mode = #tpu.pipeline_mode<synchronous>, transform_indices = @transform_5, window_bounds = array<i64: 256, 128>}, {pipeline_mode = #tpu.pipeline_mode<synchronous>, transform_indices = @transform_6, window_bounds = array<i64: 1, 128>}, {pipeline_mode = #tpu.pipeline_mode<synchronous>, transform_indices = @transform_7, window_bounds = array<i64: 128, 128>}, {pipeline_mode = #tpu.pipeline_mode<synchronous>, transform_indices = @transform_8, window_bounds = array<i64: 1, 128>}, {transform_indices = @transform_9, window_bounds = array<i64: 8, 128>}]} {
    %c0 = arith.constant 0 : index
    %c0_0 = arith.constant 0 : index
    %0 = vector.load %arg2[%c0, %c0_0] : memref<1x128xf32, #tpu.memory_space<vmem>>, vector<1x128xf32>
    %c0_1 = arith.constant 0 : index
    %c0_2 = arith.constant 0 : index
    %1 = vector.load %arg3[%c0_1, %c0_2] : memref<1x128xf32, #tpu.memory_space<vmem>>, vector<1x128xf32>
    %cst = arith.constant 1.000000e-01 : f32
    %2 = vector.broadcast %cst : f32 to vector<1x128xf32>
    %3 = arith.mulf %2, %1 : vector<1x128xf32>
    %4 = arith.addf %0, %3 : vector<1x128xf32>
    %cst_3 = arith.constant 0.000000e+00 : f32
    %cst_4 = arith.constant 1.000000e+00 : f32
    %5 = vector.broadcast %cst_3 : f32 to vector<1x128xf32>
    %6 = arith.maximumf %5, %4 : vector<1x128xf32>
    %7 = vector.broadcast %cst_4 : f32 to vector<1x128xf32>
    %8 = arith.minimumf %7, %6 : vector<1x128xf32>
    %c0_5 = arith.constant 0 : index
    %c0_6 = arith.constant 0 : index
    %9 = vector.load %arg1[%c0_5, %c0_6] : memref<8x128xbf16, #tpu.memory_space<vmem>>, vector<8x128xbf16>
    %10 = arith.extf %9 : vector<8x128xbf16> to vector<8x128xf32>
    %11 = vector.broadcast %8 : vector<1x128xf32> to vector<8x128xf32>
    %12 = arith.mulf %10, %11 : vector<8x128xf32>
    %13 = arith.truncf %12 : vector<8x128xf32> to vector<8x128xbf16>
    %c0_7 = arith.constant 0 : index
    %c0_8 = arith.constant 0 : index
    %14 = vector.load %arg4[%c0_7, %c0_8] : memref<128x256xbf16, #tpu.memory_space<vmem>>, vector<128x256xbf16>
    %cst_9 = arith.constant dense<0.000000e+00> : vector<8x256xf32>
    %15 = tpu.matmul %13, %14, %cst_9 {dimension_numbers = #tpu.dot_dimension_numbers<[1], [0], [0], [1], [0, 0, 1, 1], [], []>} : vector<8x128xbf16>, vector<128x256xbf16>, vector<8x256xf32> -> vector<8x256xf32>
    %c0_10 = arith.constant 0 : index
    %c0_11 = arith.constant 0 : index
    %16 = vector.load %arg5[%c0_10, %c0_11] : memref<1x256xf32, #tpu.memory_space<vmem>>, vector<1x256xf32>
    %17 = vector.broadcast %16 : vector<1x256xf32> to vector<8x256xf32>
    %18 = arith.addf %15, %17 : vector<8x256xf32>
    %cst_12 = arith.constant 0.000000e+00 : f32
    %19 = vector.broadcast %cst_12 : f32 to vector<8x256xf32>
    %20 = arith.maximumf %18, %19 : vector<8x256xf32>
    %21 = arith.truncf %20 : vector<8x256xf32> to vector<8x256xbf16>
    %c0_13 = arith.constant 0 : index
    %c0_14 = arith.constant 0 : index
    %22 = vector.load %arg6[%c0_13, %c0_14] : memref<256x128xbf16, #tpu.memory_space<vmem>>, vector<256x128xbf16>
    %cst_15 = arith.constant dense<0.000000e+00> : vector<8x128xf32>
    %23 = tpu.matmul %21, %22, %cst_15 {dimension_numbers = #tpu.dot_dimension_numbers<[1], [0], [0], [1], [0, 0, 1, 1], [], []>} : vector<8x256xbf16>, vector<256x128xbf16>, vector<8x128xf32> -> vector<8x128xf32>
    %c0_16 = arith.constant 0 : index
    %c0_17 = arith.constant 0 : index
    %24 = vector.load %arg7[%c0_16, %c0_17] : memref<1x128xf32, #tpu.memory_space<vmem>>, vector<1x128xf32>
    %25 = vector.broadcast %24 : vector<1x128xf32> to vector<8x128xf32>
    %26 = arith.addf %23, %25 : vector<8x128xf32>
    %cst_18 = arith.constant 0.000000e+00 : f32
    %27 = vector.broadcast %cst_18 : f32 to vector<8x128xf32>
    %28 = arith.maximumf %26, %27 : vector<8x128xf32>
    %29 = arith.truncf %28 : vector<8x128xf32> to vector<8x128xbf16>
    %c0_19 = arith.constant 0 : index
    %c0_20 = arith.constant 0 : index
    %30 = vector.load %arg8[%c0_19, %c0_20] : memref<128x128xbf16, #tpu.memory_space<vmem>>, vector<128x128xbf16>
    %cst_21 = arith.constant dense<0.000000e+00> : vector<8x128xf32>
    %31 = tpu.matmul %29, %30, %cst_21 {dimension_numbers = #tpu.dot_dimension_numbers<[1], [0], [0], [1], [0, 0, 1, 1], [], []>} : vector<8x128xbf16>, vector<128x128xbf16>, vector<8x128xf32> -> vector<8x128xf32>
    %c0_22 = arith.constant 0 : index
    %c0_23 = arith.constant 0 : index
    %32 = vector.load %arg9[%c0_22, %c0_23] : memref<1x128xf32, #tpu.memory_space<vmem>>, vector<1x128xf32>
    %33 = vector.broadcast %32 : vector<1x128xf32> to vector<8x128xf32>
    %34 = arith.addf %31, %33 : vector<8x128xf32>
    %c0_24 = arith.constant 0 : index
    %c0_25 = arith.constant 0 : index
    %35 = vector.load %arg10[%c0_24, %c0_25] : memref<8x128xf32, #tpu.memory_space<vmem>>, vector<8x128xf32>
    tpu.vector_store %arg10[%c0_24, %c0_25], %34 {strides = array<i32>} : memref<8x128xf32, #tpu.memory_space<vmem>>, vector<8x128xf32>,
    return
  }
  func.func @transform_0(%arg0: i32) -> (i32, i32) {
    %c0_i32 = arith.constant 0 : i32
    %c0_i32_0 = arith.constant 0 : i32
    return %arg0, %c0_i32 : i32, i32
  }
  func.func @transform_1(%arg0: i32) -> (i32, i32) {
    %c0_i32 = arith.constant 0 : i32
    %c0_i32_0 = arith.constant 0 : i32
    %c0_i32_1 = arith.constant 0 : i32
    return %c0_i32, %c0_i32_0 : i32, i32
  }
  func.func @transform_2(%arg0: i32) -> (i32, i32) {
    %c0_i32 = arith.constant 0 : i32
    %c0_i32_0 = arith.constant 0 : i32
    %c0_i32_1 = arith.constant 0 : i32
    return %c0_i32, %c0_i32_0 : i32, i32
  }
  func.func @transform_3(%arg0: i32) -> (i32, i32) {
    %c0_i32 = arith.constant 0 : i32
    %c0_i32_0 = arith.constant 0 : i32
    %c0_i32_1 = arith.constant 0 : i32
    return %c0_i32, %c0_i32_0 : i32, i32
  }
  func.func @transform_4(%arg0: i32) -> (i32, i32) {
    %c0_i32 = arith.constant 0 : i32
    %c0_i32_0 = arith.constant 0 : i32
    %c0_i32_1 = arith.constant 0 : i32
    return %c0_i32, %c0_i32_0 : i32, i32
  }
  func.func @transform_5(%arg0: i32) -> (i32, i32) {
    %c0_i32 = arith.constant 0 : i32
    %c0_i32_0 = arith.constant 0 : i32
    %c0_i32_1 = arith.constant 0 : i32
    return %c0_i32, %c0_i32_0 : i32, i32
  }
  func.func @transform_6(%arg0: i32) -> (i32, i32) {
    %c0_i32 = arith.constant 0 : i32
    %c0_i32_0 = arith.constant 0 : i32
    %c0_i32_1 = arith.constant 0 : i32
    return %c0_i32, %c0_i32_0 : i32, i32
  }
  func.func @transform_7(%arg0: i32) -> (i32, i32) {
    %c0_i32 = arith.constant 0 : i32
    %c0_i32_0 = arith.constant 0 : i32
    %c0_i32_1 = arith.constant 0 : i32
    return %c0_i32, %c0_i32_0 : i32, i32
  }
  func.func @transform_8(%arg0: i32) -> (i32, i32) {
    %c0_i32 = arith.constant 0 : i32
    %c0_i32_0 = arith.constant 0 : i32
    %c0_i32_1 = arith.constant 0 : i32
    return %c0_i32, %c0_i32_0 : i32, i32
  }
  func.func @transform_9(%arg0: i32) -> (i32, i32) {
    %c0_i32 = arith.constant 0 : i32
    %c0_i32_0 = arith.constant 0 : i32
    return %arg0, %c0_i32 : i32, i32
  }
}

</mosaic_0001>

<bundles_post_ra>
// kernel: tpu_custom_call.1
= control target key start
LH: loop header
LB: loop body
LE: loop exit
PB: predicated region body
PF: predicated region fallthrough
CT: control target
= control target key end

     0   :  { %s1724_s0 = inlined_call_operand.hbm [shape: bf16[24,128], index: 0, kind: input, shape index: {}]   ;;  %s1725_s1 = inlined_call_operand.vmem [shape: f32[1,128], index: 1, kind: input, shape index: {}]   ;;  %s1726_s2 = inlined_call_operand.vmem [shape: f32[1,128], index: 2, kind: input, shape index: {}]   ;;  %s1727_s3 = inlined_call_operand.hbm [shape: bf16[128,256], index: 3, kind: input, shape index: {}]   ;;  %s1728_s4 = inlined_call_operand.vmem [shape: f32[1,256], index: 4, kind: input, shape index: {}]   ;;  %s1729_s5 = inlined_call_operand.hbm [shape: bf16[256,128], index: 5, kind: input, shape index: {}]   ;;  %s1730_s6 = inlined_call_operand.vmem [shape: f32[1,128], index: 6, kind: input, shape index: {}]   ;;  %s1731_s7 = inlined_call_operand.hbm [shape: bf16[128,128], index: 7, kind: input, shape index: {}]   ;;  %s1732_s8 = inlined_call_operand.vmem [shape: f32[1,128], index: 8, kind: input, shape index: {}]   ;;  %s1733_s9 = inlined_call_operand.hbm [shape: f32[24,128], index: 9, kind: output, shape index: {}]  }
   0x1   :  { %1740 = sst [smem:[#allocation17_spill]] %s1727_s3 }
   0x2   :  { %1741 = sst [smem:[#allocation18_spill]] %s1733_s9 }
   0x3   :  { %14 = vsyncpa [#allocation3], 0 }
   0x4   :  { %16 = vsyncpa [#allocation3 + $0x1], 0 }
   0x5   :  { %17 = vsyncpa [#allocation6], 0 }
   0x6   :  { %18 = vsyncpa [#allocation9], 0 }
   0x7   :  { %19 = vsyncpa [#allocation4], 0 }
   0x8   :  { %21 = vsyncpa [#allocation4 + $0x1], 0  ;;  %s1459_s30 = smov 0   ;;  %s1461_s10 = smov 0  }
   0x9   :  { %s1463_s11 = smov 0   ;;  %s1465_s12 = smov 0  }
   0xa LB: > { %1742 = sst [smem:[#allocation15_spill]] %s1383_s30  ;;  %s1480_s13 = sadd.s32 4294967295, %s1395_s12   ;;  %s1395_s12 = sphi %s1465_s12, %s1766_s12   ;;  %s1391_s11 = sphi %s1463_s11, %s1765_s11   ;;  %s1387_s10 = sphi %s1461_s10, %s1764_s10   ;;  %s1383_s30 = sphi %s1459_s30, %s1763_s30  }
   0xb   : > { %s964_s14 = sadd.s32 4294967294, %s1395_s12   ;;  %p47_p0 = scmp.ne.s32.totalorder %s1387_s10, %s1383_s30 }
   0xc   : > { %p1734_p1 = scmp.eq.s32.totalorder %s1480_s13, 0  ;;  %p245_p3 = scmp.eq.s32.totalorder %s964_s14, 2 }
   0xd   : > { %p965_p5 = scmp.ge.s32.totalorder %s1395_s12, 1  ;;  %p252_p7 = scmp.lt.s32.totalorder %s1395_s12, 4 }
   0xe   : > { %p1489_p4 = por %p1734_p1, %p47_p0  ;;  %p1494_p6 = por %p245_p3, %p47_p0 }
   0xf   : > { %p1499_p8 = pnand %p965_p5, %p252_p7  ;;  %s1397_s18 = smov [#allocation5]  }
  0x10   : > { %s1743_s15 = scalar_select %p1489_p4, 1, 0 }
  0x11   : > { %s1744_s16 = scalar_select %p1494_p6, 1, 0 }
  0x12   : > { %s1746_s17 = scalar_select %p1499_p8, 1, 0 }
  0x13   : > { %1745 = sst [smem:[#allocation16_spill]] %s1744_s16  ;;  %s270_s19 = sshll.u32 %s1397_s18, 4  ;;  %s271_s19 = int_to_ptr.vmem [resolvable:$true] %s270_s19 }
  0x14   : > { %p1091_p9 = pneg %p1499_p8  ;;  %s1398_s21 = smov [#allocation7]  }
  0x15   : > { %s286_s22 = sshll.u32 %s1398_s21, 4  ;;  %s1748_s3 = sld [smem:[#allocation17_spill]]  ;;  %s1511_s22 = int_to_ptr.vmem [resolvable:$true] %s286_s22 }
  0x16   : > { %p1507_p10 = pnand %p1091_p9, %p1734_p1 }
  0x18   : > { %p1521_p12 = pneg %p1507_p10 }
  0x1b   : > { %s1207_s25 = scalar_lea.hbm %s1748_s3, 2048 }
  0x1c   : > { %p1208_p11 = scmp.ne.s32.totalorder %s1748_s3, %s1207_s25  ;;  %p1214_p3 = scmp.lt.u32.totalorder %s1207_s25, %s1748_s3 }
  0x1e   : > { %p1210_p13 = pnand %p1521_p12, %p1208_p11 }
  0x20   : > { %p1211_p0 = pneg %p1210_p13 }
  0x22   : > { %p1216_p5 = pnand %p1214_p3, %p1211_p0 }
  0x24   : > { %1219 = shalt.err (!%p1216_p5)
}
  0x25   : > { %s1220_s18 = scalar_lea.vmem %s271_s19, 2048  ;;  %p1228_p2 = scmp.lt.s32.totalorder %s271_s19, %s271_s19 }
  0x26   : > { %p1221_p7 = scmp.ne.s32.totalorder %s271_s19, %s1220_s18  ;;  %p1229_p6 = scmp.lt.s32.totalorder %s1220_s18, %s1220_s18 }
  0x28   : > { %p1223_p9 = pnand %p1221_p7, %p1521_p12  ;;  %p1230_p4 = por %p1229_p6, %p1228_p2 }
  0x2a   : > { %p1224_p1 = pneg %p1223_p9 }
  0x2c   : > { %p1231_p8 = pnand %p1230_p4, %p1224_p1 }
  0x2e   : > { %1234 = shalt.err (!%p1231_p8)
}
  0x2f   : > { %s1399_s21 = smov 128   ;;  %s1400_s23 = smov 8  }
  0x30   : > { %1094 = dma.hbm_to_vmem [thread:$0]  (!%p1507_p10), %s1748_s3, 2048, %s271_s19, [#allocation6], %s1399_s21, %s1399_s21, %s1400_s23  }
  0x31   : > { %s1235_s29 = scalar_lea.hbm %s1729_s5, 2048 }
  0x32   : > { %p1236_p11 = scmp.ne.s32.totalorder %s1729_s5, %s1235_s29  ;;  %p1242_p4 = scmp.lt.u32.totalorder %s1235_s29, %s1729_s5 }
  0x34   : > { %p1238_p1 = pnand %p1236_p11, %p1521_p12 }
  0x36   : > { %p1239_p2 = pneg %p1238_p1 }
  0x38   : > { %p1244_p6 = pnand %p1242_p4, %p1239_p2 }
  0x3a   : > { %1247 = shalt.err (!%p1244_p6)
}
  0x3b   : > { %s1248_s19 = scalar_lea.vmem %s1511_s22, 2048  ;;  %p1256_p3 = scmp.lt.s32.totalorder %s1511_s22, %s1511_s22 }
  0x3c   : > { %p1249_p8 = scmp.ne.s32.totalorder %s1511_s22, %s1248_s19  ;;  %p1257_p5 = scmp.lt.s32.totalorder %s1248_s19, %s1248_s19 }
  0x3e   : > { %p1251_p13 = pnand %p1249_p8, %p1521_p12  ;;  %p1258_p7 = por %p1257_p5, %p1256_p3 }
  0x40   : > { %p1252_p0 = pneg %p1251_p13 }
  0x42   : > { %p1259_p9 = pnand %p1258_p7, %p1252_p0 }
  0x44   : > { %1262 = shalt.err (!%p1259_p9)
}
  0x45   : > { %s1401_s16 = smov 64   ;;  %s1402_s30 = smov 4  }
  0x46   : > { %1097 = dma.hbm_to_vmem [thread:$0]  (!%p1507_p10), %s1729_s5, 2048, %s1511_s22, [#allocation6], %s1401_s16, %s1401_s16, %s1402_s30  }
  0x47   : > { %s1403_s24 = smov [#allocation8]   ;;  %s1561_s26 = sadd.s32 1, %s1395_s12  }
  0x48   : > { %s302_s25 = sshll.u32 %s1403_s24, 4  ;;  %s1263_s14 = scalar_lea.hbm %s1731_s7, 1024  ;;  %s303_s25 = int_to_ptr.vmem [resolvable:$true] %s302_s25 }
  0x49   : > { %p1264_p11 = scmp.ne.s32.totalorder %s1731_s7, %s1263_s14  ;;  %p1270_p4 = scmp.lt.u32.totalorder %s1263_s14, %s1731_s7 }
  0x4b   : > { %p1266_p1 = pnand %p1264_p11, %p1521_p12 }
  0x4d   : > { %p1267_p2 = pneg %p1266_p1 }
  0x4f   : > { %p1272_p6 = pnand %p1270_p4, %p1267_p2 }
  0x51   : > { %1275 = shalt.err (!%p1272_p6)
}
  0x52   : > { %s1276_s22 = scalar_lea.vmem %s303_s25, 1024  ;;  %p1284_p3 = scmp.lt.s32.totalorder %s303_s25, %s303_s25 }
  0x53   : > { %p1277_p8 = scmp.ne.s32.totalorder %s303_s25, %s1276_s22  ;;  %p1285_p5 = scmp.lt.s32.totalorder %s1276_s22, %s1276_s22 }
  0x55   : > { %p1279_p13 = pnand %p1277_p8, %p1521_p12  ;;  %p1286_p7 = por %p1285_p5, %p1284_p3 }
  0x57   : > { %p1280_p0 = pneg %p1279_p13 }
  0x59   : > { %p1287_p9 = pnand %p1286_p7, %p1280_p0 }
  0x5b   : > { %1290 = shalt.err (!%p1287_p9)
}
  0x5c   : > { %1100 = dma.hbm_to_vmem [thread:$0]  (!%p1507_p10), %s1731_s7, 1024, %s303_s25, [#allocation9], %s1401_s16, %s1401_s16, %s1402_s30  }
  0x5d   : > { %s31_s3 = ssub.s32 %s1395_s12, %s1561_s26  ;;  %s34_s9 = sadd.s32 1, %s1391_s11 }
  0x5e   : > { %p32_p12 = scmp.eq.s32.totalorder %s31_s3, 0  ;;  %p41_p11 = scmp.ne.s32.totalorder %s1391_s11, %s1387_s10 }
  0x5f   : > { %p42_p1 = scmp.eq.s32.totalorder %s1395_s12, 0  ;;  %p1112_p2 = scmp.lt.s32.totalorder %s1395_s12, 3 }
  0x60   : > { %s1589_s20 = scalar_select %p32_p12, %s1391_s11, %s34_s9  }
  0x61   : > { %p43_p4 = por %p42_p1, %p41_p11  ;;  %p1750_p6 = scmp.eq.s32.totalorder %s1480_s13, 2 }
  0x62   : > { %s319_s24 = sand.u32 1, %s1391_s11   ;;  %s971_s27 = sshll.u32 %s1395_s12, 6 }
  0x63   : > { %p1593_p8 = por %p1750_p6, %p41_p11  ;;  %s970_s29 = sshll.u32 %s319_s24, 2 }
  0x64   : > { %s1602_s16 = scalar_lea.hbm %s1724_s0, %s971_s27  ;;  %s323_s30 = scalar_lea.vmem [#allocation2], %s970_s29 }
  0x65   : > { %s330_s25 = sshll.u32 %s323_s30, 4  ;;  %p1604_p10 = pnand %p1112_p2, %p43_p4  ;;  %s1608_s25 = int_to_ptr.vmem [resolvable:$true] %s330_s25 }
  0x66   : > { %s320_s22 = scalar_lea.sflag [#allocation3], %s319_s24  ;;  %s1291_s21 = scalar_lea.hbm %s1602_s16, 64 }
  0x67   : > { %p1292_p13 = scmp.ne.s32.totalorder %s1602_s16, %s1291_s21  ;;  %p1293_p0 = pneg %p1604_p10 }
  0x68   : > { %s1296_s9 = scalar_lea.hbm %s1724_s0, 192  ;;  %p1297_p7 = scmp.lt.u32.totalorder %s1602_s16, %s1724_s0 }
  0x69   : > { %p1294_p3 = pnand %p1293_p0, %p1292_p13  ;;  %p1298_p9 = scmp.lt.u32.totalorder %s1296_s9, %s1291_s21 }
  0x6a   : > { %p1300_p11 = scmp.lt.u32.totalorder %s1291_s21, %s1602_s16 }
  0x6b   : > { %p1295_p5 = pneg %p1294_p3  ;;  %p1299_p12 = por %p1298_p9, %p1297_p7 }
  0x6d   : > { %p1301_p1 = por %p1300_p11, %p1299_p12 }
  0x6f   : > { %p1302_p2 = pnand %p1301_p1, %p1295_p5 }
  0x71   : > { %1305 = shalt.err (!%p1302_p2)
}
  0x72   : > { %s1306_s24 = scalar_lea.vmem %s1608_s25, 64  ;;  %s1404_s14 = smov [#allocation2]  }
  0x73   : > { %p1307_p4 = scmp.ne.s32.totalorder %s1608_s25, %s1306_s24  ;;  %s1311_s18 = sshll.u32 %s1404_s14, 4  ;;  %s1312_s18 = int_to_ptr.vmem [resolvable:$false] %s1311_s18 }
  0x74   : > { %s1313_s30 = scalar_lea.vmem %s1312_s18, 128  ;;  %p1314_p3 = scmp.lt.s32.totalorder %s1608_s25, %s1312_s18 }
  0x75   : > { %p1309_p6 = pnand %p1307_p4, %p1293_p0  ;;  %p1315_p7 = scmp.lt.s32.totalorder %s1313_s30, %s1306_s24 }
  0x77   : > { %p1310_p13 = pneg %p1309_p6  ;;  %p1316_p9 = por %p1315_p7, %p1314_p3 }
  0x79   : > { %p1317_p12 = pnand %p1316_p9, %p1310_p13 }
  0x7b   : > { %1320 = shalt.err (!%p1317_p12)
}
  0x7c   : > { %1104 = dma.hbm_to_vmem [thread:$0]  (!%p1604_p10), %s1602_s16, 64, %s1608_s25, %s320_s22  }
  0x7d   : > { %p1753_p5 = scmp.ne.s32.totalorder %s1746_s17, 0 }
  0x7e   : > { %s1638_s21 = sand.u32 (!%p1753_p5), 1, %s1387_s10   ;;  %p1754_p0 = scmp.ne.s32.totalorder (!%p1753_p5), %s1743_s15, 0 }
  0x7f   : > { %339 = sbr.rel (%p1753_p5) target bundleno = 843 (0x34b), region = 56  ;;  %s973_s23 = sshll.u32 (!%p1753_p5), %s1638_s21, 2 }
  0x80   : > { %s342_s3 = scalar_lea.sflag (!%p1753_p5), [#allocation3], %s1638_s21  ;;  %s1642_s9 = scalar_lea.vmem (!%p1753_p5), [#allocation2], %s973_s23 }
  0x86   : > { %1366 = dma.done.wait (%p1754_p0), %s342_s3, 64  }
  0x87   : > { %1368 = vsyncadd (%p1754_p0), %s342_s3, 4294967232  ;;  %p1755_p10 = scmp.eq.s32.totalorder %s1480_s13, 0 }
  0x89   : > { %1370 = dma.done.wait (%p1755_p10), [#allocation6], 4096   ;;  %p1756_p11 = pmov %p1755_p10 }
  0x8a   : > { %p1757_p1 = pmov %p1755_p10 }
  0x8b   : > { %1372 = vsyncadd (%p1756_p11), [#allocation6], 4294963200 }
  0x8c   : > { %1374 = dma.done.wait (%p1757_p1), [#allocation9], 1024   ;;  %p1758_p2 = pmov %p1757_p1 }
  0x8d   : > { %v1405_v0 = vmov 0   ;;  %v1159_v1 = vld [vmem:[#allocation5 + $0x4] ss:$8 sps:$4 sm:$0xff]   ;;  %v1161_v2 = vld [vmem:[#allocation5] ss:$8 sps:$4 sm:$0xff]   ;;  %v402_v10 = vlaneseq  ;;  %v1187_v23 = vld [vmem:[#allocation7 + $0x50] sm:$0xff]  }
  0x8e   : > { %1376 = vsyncadd (%p1758_p2), [#allocation9], 4294966272  ;;  %549 = vmatprep.mubr.bf16.mxu0 %v1405_v0  ;;  %517 = vmatprep.subr.bf16.mxu0 %v1159_v1  ;;  %v1162_v3 = vld [vmem:[#allocation5 + $0x14] ss:$8 sps:$4 sm:$0xff]   ;;  %v1164_v4 = vld [vmem:[#allocation5 + $0x10] ss:$8 sps:$4 sm:$0xff]  }
  0x8f   : > { %518 = vmatpush1.bf16.msra.mxu0 %v1161_v2  ;;  %v1165_v5 = vld [vmem:[#allocation5 + $0x24] ss:$8 sps:$4 sm:$0xff]   ;;  %v1167_v6 = vld [vmem:[#allocation5 + $0x20] ss:$8 sps:$4 sm:$0xff]   ;;  %v1168_v7 = vld [vmem:[#allocation5 + $0x34] ss:$8 sps:$4 sm:$0xff]  }
  0x90   : > { %519 = vmatprep.subr.bf16.mxu0 %v1162_v3  ;;  %v1170_v8 = vld [vmem:[#allocation5 + $0x30] ss:$8 sps:$4 sm:$0xff]   ;;  %v1171_v9 = vld [vmem:[#allocation5 + $0x44] ss:$8 sps:$4 sm:$0xff]   ;;  %v1173_v16 = vld [vmem:[#allocation5 + $0x40] ss:$8 sps:$4 sm:$0xff]  }
  0x91   : > { %v393_v11 = vld [vmem:[%s1725_s1] sm:$0x1]  ;;  %v1183_v14 = vld [vmem:[#allocation7 + $0x40] sm:$0xff]   ;;  %v1174_v17 = vld [vmem:[#allocation5 + $0x54] ss:$8 sps:$4 sm:$0xff]   ;;  %v1662_v19 = vshrl.u32 %v402_v10, 7 }
  0x92   : > { %v394_v12 = vld [vmem:[%s1726_s2] sm:$0x1]  ;;  %v1184_v15 = vld [vmem:[#allocation7] sm:$0xff]   ;;  %1024 = vmatprep.subr.bf16.mxu1 %v1183_v14  ;;  %v1185_v20 = vld [vmem:[#allocation7 + $0x48] sm:$0xff]   ;;  %v1406_v48 = vmov 0.0   ;;  %vm1407_vm0 = vmmov 0  }
  0x93   : > { %520 = vmatpush1.bf16.msra.mxu0 %v1164_v4  ;;  %v395_v13 = vmul.f32 0.1, %v394_v12  ;;  %1025 = vmatpush3.bf16.msra.mxu1 %v1184_v15  ;;  %v1186_v21 = vld [vmem:[#allocation7 + $0x8] sm:$0xff]   ;;  %v1176_v24 = vld [vmem:[#allocation5 + $0x50] ss:$8 sps:$4 sm:$0xff]   ;;  %v404_v28 = vsub.s32 0, %v1662_v19 }
  0x94   : > { %521 = vmatprep.subr.bf16.mxu0 %v1165_v5  ;;  %1026 = vmatprep.subr.bf16.mxu1 %v1185_v20  ;;  %v399_v25 = vld [vmem:[%s1642_s9] sm:$0xf]  ;;  %v1177_v26 = vld [vmem:[#allocation5 + $0x64] ss:$8 sps:$4 sm:$0xff]   ;;  %v1188_v29 = vld [vmem:[#allocation7 + $0x10] sm:$0xff]   ;;  %v433_v55 = vsub.s32 1, %v1662_v19 }
  0x95   : > { %v396_v18 = vadd.f32 %v395_v13, %v393_v11  ;;  %v1189_v30 = vld [vmem:[#allocation7 + $0x58] sm:$0xff]   ;;  %v1179_v31 = vld [vmem:[#allocation5 + $0x60] ss:$8 sps:$4 sm:$0xff]   ;;  %v400_v33 = vunpack.c.l.bf16 %v399_v25  ;;  %v1195_v43 = vld [vmem:[#allocation7 + $0x70] sm:$0xff]   ;;  %s977_s24 = sshll.u32 %s1638_s21, 3  ;;  %s1021_s30 = sshll.u32 %s1480_s13, 7 }
  0x96   : > { %v1180_v32 = vld [vmem:[#allocation5 + $0x74] ss:$8 sps:$4 sm:$0xff]   ;;  %v1191_v36 = vld [vmem:[#allocation7 + $0x60] sm:$0xff]   ;;  %v1182_v37 = vld [vmem:[#allocation5 + $0x70] ss:$8 sps:$4 sm:$0xff]   ;;  %s391_s23 = scalar_lea.vmem [#allocation10], %s977_s24 }
  0x97   : > { %522 = vmatpush1.bf16.msra.mxu0 %v1167_v6  ;;  %v397_v22 = vmax.f32 %v396_v18, 0.0  ;;  %1027 = vmatpush3.bf16.msra.mxu1 %v1186_v21  ;;  %v1190_v35 = vld [vmem:[#allocation7 + $0x18] sm:$0xff]   ;;  %v1192_v38 = vld [vmem:[#allocation7 + $0x20] sm:$0xff]   ;;  %v1193_v40 = vld [vmem:[#allocation7 + $0x68] sm:$0xff]   ;;  %s865_s3 = sshll.u32 %s391_s23, 4  ;;  %s1759_s17 = sld [smem:[#allocation18_spill]]  ;;  %s1683_s3 = int_to_ptr.vmem [resolvable:$true] %s865_s3 }
  0x98   : > { %523 = vmatprep.subr.bf16.mxu0 %v1168_v7  ;;  %1028 = vmatprep.subr.bf16.mxu1 %v1187_v23  ;;  %v1194_v41 = vld [vmem:[#allocation7 + $0x28] sm:$0xff]   ;;  %v1196_v44 = vld [vmem:[#allocation7 + $0x30] sm:$0xff]   ;;  %v1197_v45 = vld [vmem:[#allocation7 + $0x78] sm:$0xff]   ;;  %s852_s25 = scalar_lea.sflag [#allocation4], %s1638_s21  ;;  %s1321_s13 = scalar_lea.vmem %s1683_s3, 128 }
  0x99   : > { %v398_v27 = vmin.f32 %v397_v22, 1.0  ;;  %v1198_v46 = vld [vmem:[#allocation7 + $0x38] sm:$0xff]   ;;  %v1199_v47 = vld [vmem:[#allocation8] sm:$0xff]   ;;  %v1200_v49 = vld [vmem:[#allocation8 + $0x8] sm:$0xff]   ;;  %p1322_p4 = scmp.ne.s32.totalorder %s1683_s3, %s1321_s13  ;;  %s1408_s19 = smov [#allocation10]  }
  0x9a   : > { %v1201_v50 = vld [vmem:[#allocation8 + $0x10] sm:$0xff]   ;;  %v1202_v51 = vld [vmem:[#allocation8 + $0x18] sm:$0xff]   ;;  %v1203_v52 = vld [vmem:[#allocation8 + $0x20] sm:$0xff]   ;;  %s1325_s22 = sshll.u32 %s1408_s19, 4  ;;  %s1326_s22 = int_to_ptr.vmem [resolvable:$false] %s1325_s22 }
  0x9b   : > { %524 = vmatpush1.bf16.msra.mxu0 %v1170_v8  ;;  %v405_v34 = vrot.slane %v398_v27, %v404_v28  ;;  %1029 = vmatpush3.bf16.msra.mxu1 %v1188_v29  ;;  %v1204_v53 = vld [vmem:[#allocation8 + $0x28] sm:$0xff]   ;;  %v425_v54 = vld [vmem:[%s1728_s4] sm:$0x3]  ;;  %v1205_v4 = vld [vmem:[#allocation8 + $0x30] sm:$0xff]   ;;  %p1323_p6 = pnand %p1322_p4, %p1593_p8  ;;  %s1327_s27 = scalar_lea.vmem %s1326_s22, 256 }
  0x9c   : > { %525 = vmatprep.subr.bf16.mxu0 %v1171_v9  ;;  %1030 = vmatprep.subr.bf16.mxu1 %v1189_v30  ;;  %v430_v56 = vrot.slane %v425_v54, %v404_v28  ;;  %v434_v57 = vrot.slane %v425_v54, %v433_v55  ;;  %v1206_v5 = vld [vmem:[#allocation8 + $0x38] sm:$0xff]   ;;  %p1328_p3 = scmp.lt.s32.totalorder %s1683_s3, %s1326_s22  ;;  %p1329_p7 = scmp.lt.s32.totalorder %s1327_s27, %s1321_s13 }
  0x9d   : > { %v407_v39 = vmul.f32 %v405_v34, %v400_v33  ;;  %v994_v7 = vld [vmem:[%s1730_s6] ss:$0 sm:$0xff]  ;;  %s1681_s16 = scalar_lea.hbm %s1759_s17, %s1021_s30  ;;  %p1324_p13 = pneg %p1323_p6 }
  0x9e   : > { %v1011_v15 = vld [vmem:[%s1732_s8] ss:$0 sm:$0xff]  ;;  %p1330_p9 = por %p1329_p7, %p1328_p3 }
  0x9f   : > { %526 = vmatpush1.bf16.msra.mxu0 %v1173_v16  ;;  %1031 = vmatpush3.bf16.msra.mxu1 %v1190_v35  ;;  %v408_v42 = vpack.c.bf16 %v407_v39, %v407_v39 }
  0xa0   : > { %527 = vmatprep.subr.bf16.mxu0 %v1174_v17  ;;  %1032 = vmatprep.subr.bf16.mxu1 %v1191_v36  ;;  %p1331_p12 = pnand %p1330_p9, %p1324_p13 }
  0xa3   : > { %528 = vmatpush1.bf16.msra.mxu0 %v1176_v24  ;;  %1033 = vmatpush3.bf16.msra.mxu1 %v1192_v38 }
  0xa4   : > { %529 = vmatprep.subr.bf16.mxu0 %v1177_v26  ;;  %1034 = vmatprep.subr.bf16.mxu1 %v1193_v40 }
  0xa7   : > { %530 = vmatpush1.bf16.msra.mxu0 %v1179_v31  ;;  %1035 = vmatpush3.bf16.msra.mxu1 %v1194_v41 }
  0xa8   : > { %531 = vmatprep.subr.bf16.mxu0 %v1180_v32  ;;  %1036 = vmatprep.subr.bf16.mxu1 %v1195_v43 }
  0xab   : > { %532 = vmatpush1.bf16.msra.mxu0 %v1182_v37  ;;  %1037 = vmatpush3.bf16.msra.mxu1 %v1196_v44 }
  0xac   : > { %1038 = vmatprep.subr.bf16.mxu1 %v1197_v45  ;;  %1055 = vmatprep.subr.bf16.mxu0 %v1406_v48 }
  0xae   : > { %550 = vmatmul.mubr.bf16.vlgmr.msra.gmra.mrb[0].mxu0 %v408_v42 }
  0xaf   : > { %1039 = vmatpush3.bf16.msra.mxu1 %v1198_v46  ;;  %1056 = vmatpush3.bf16.msra.mxu0 %v1199_v47 }
  0xb0   : > { %1057 = vmatprep.subr.bf16.mxu0 %v1406_v48  ;;  %1071 = vmatprep.mubr.msk.bf16.mxu0 %vm1407_vm0, %v1406_v48 }
  0xb3   : > { %1058 = vmatpush3.bf16.msra.mxu0 %v1200_v49 }
  0xb4   : > { %1059 = vmatprep.subr.bf16.mxu0 %v1406_v48 }
  0xb7   : > { %1060 = vmatpush3.bf16.msra.mxu0 %v1201_v50 }
  0xb8   : > { %1061 = vmatprep.subr.bf16.mxu0 %v1406_v48 }
  0xbb   : > { %1062 = vmatpush3.bf16.msra.mxu0 %v1202_v51 }
  0xbc   : > { %1063 = vmatprep.subr.bf16.mxu0 %v1406_v48 }
  0xbf   : > { %1064 = vmatpush3.bf16.msra.mxu0 %v1203_v52 }
  0xc0   : > { %1065 = vmatprep.subr.bf16.mxu0 %v1406_v48 }
  0xc3   : > { %1066 = vmatpush3.bf16.msra.mxu0 %v1204_v53 }
  0xc4   : > { %1067 = vmatprep.subr.bf16.mxu0 %v1406_v48 }
  0xc7   : > { %1068 = vmatpush3.bf16.msra.mxu0 %v1205_v4 }
  0xc8   : > { %1069 = vmatprep.subr.bf16.mxu0 %v1406_v48 }
  0xcb   : > { %1070 = vmatpush3.bf16.msra.mxu0 %v1206_v5 }
 0x181   : > { %v551_v58 = vpop.f32.mrb[0].mxu0 }
 0x182   : > { %v552_v59 = vadd.f32 %v551_v58, %v430_v56  ;;  %v553_v60 = vpop.f32.mrb[1].mxu0 }
 0x183   : > { %v554_v61 = vadd.f32 %v553_v60, %v434_v57  ;;  %v555_v62 = vpop.f32.mrb[2].mxu0 }
 0x184   : > { %v558_v63 = vmax.f32 %v552_v59, 0.0  ;;  %v556_v0 = vpop.f32.mrb[3].mxu0 }
 0x185   : > { %v559_v1 = vmax.f32 %v554_v61, 0.0 }
 0x186   : > { %v560_v3 = vpack.c.bf16 %v558_v63, %v558_v63 }
 0x187   : > { %v561_v2 = vpack.c.bf16 %v559_v1, %v559_v1 }
 0x189   : > { %729 = vmatprep.mubr.bf16.mxu1 %v561_v2 }
 0x18a   : > { %730 = vmatmul.mubr.bf16.vlgmr.msra.gmra.mrb[0].mxu1 %v560_v3 }
 0x25d   : > { %v1040_v6 = vpop.f32.mrb[0].mxu1 }
 0x25e   : > { %v1041_v8 = vpop.f32.mrb[1].mxu1 }
 0x25f   : > { %v1042_v9 = vadd.f32 %v1041_v8, %v1040_v6  ;;  %v1043_v10 = vpop.f32.mrb[2].mxu1 }
 0x260   : > { %v1044_v11 = vpop.f32.mrb[3].mxu1 }
 0x261   : > { %v732_v12 = vadd.f32 %v1042_v9, %v994_v7 }
 0x263   : > { %v737_v13 = vmax.f32 %v732_v12, 0.0 }
 0x265   : > { %v738_v14 = vpack.c.bf16 %v737_v13, %v737_v13 }
 0x267   : > { %1072 = vmatmul.mubr.bf16.vlgmr.msra.gmra.mrb[4].mxu0 %v738_v14 }
 0x33a   : > { %v844_v16 = vpop.f32.mrb[4].mxu0 }
 0x33b   : > { %v845_v17 = vadd.f32 %v1011_v15, %v844_v16  ;;  %v1073_v18 = vpop.f32.mrb[5].mxu0 }
 0x33c   : > { %v847_v19 = vpop.f32.mrb[6].mxu0 }
 0x33d   : > { %850 = vst [vmem:[%s391_s23] sm:$0xff] %v845_v17  ;;  %v1074_v20 = vpop.f32.mrb[7].mxu0 }
 0x33e   : > { %1334 = shalt.err (!%p1331_p12)
}
 0x33f   : > { %s1335_s21 = scalar_lea.hbm %s1681_s16, 128  ;;  %s1339_s14 = scalar_lea.hbm %s1759_s17, 384 }
 0x340   : > { %p1336_p5 = scmp.ne.s32.totalorder %s1681_s16, %s1335_s21  ;;  %p1340_p11 = scmp.lt.u32.totalorder %s1681_s16, %s1759_s17 }
 0x341   : > { %p1341_p1 = scmp.lt.u32.totalorder %s1339_s14, %s1335_s21  ;;  %p1343_p4 = scmp.lt.u32.totalorder %s1335_s21, %s1681_s16 }
 0x342   : > { %p1337_p0 = pnand %p1336_p5, %p1593_p8 }
 0x343   : > { %p1342_p2 = por %p1341_p1, %p1340_p11 }
 0x344   : > { %p1338_p10 = pneg %p1337_p0 }
 0x345   : > { %p1344_p6 = por %p1343_p4, %p1342_p2 }
 0x347   : > { %p1345_p13 = pnand %p1344_p6, %p1338_p10 }
 0x349   : > { %1348 = shalt.err (!%p1345_p13)
}
 0x34a   : > { %1089 = dma.vmem_to_hbm [thread:$0]  (%p1593_p8), %s1683_s3, 128, %s1681_s16, %s852_s25  }
 0x34b PF: > { %s1760_s23 = sld [smem:[#allocation15_spill]]  ;;  %s1761_s9 = sld [smem:[#allocation16_spill]] }
 0x34c   : > { %p1116_p3 = scmp.ge.s32.totalorder %s1395_s12, 2 }
 0x351   : > { %s877_s15 = sand.u32 1, %s1760_s23   ;;  %p1762_p7 = scmp.ne.s32.totalorder %s1761_s9, 0 }
 0x352   : > { %s878_s13 = scalar_lea.sflag [#allocation4], %s877_s15 }
 0x353   : > { %p1106_p9 = pnand %p1116_p3, %p1762_p7 }
 0x355   : > { %1378 = dma.done.wait (!%p1106_p9), %s878_s13, 128  }
 0x356   : > { %1380 = vsyncadd (!%p1106_p9), %s878_s13, 4294967168  ;;  %p24_p12 = scmp.ge.s32.totalorder %s1561_s26, 5   ;;  %s1763_s30 = smov %s1387_s10 }
 0x357   : > { %s1764_s10 = smov %s1391_s11  ;;  %s1765_s11 = smov %s1589_s20 }
 0x358   : > { %s1766_s12 = smov %s1561_s26  ;;  %26 = sbr.rel (!%p24_p12) target bundleno = 10 (0xa), region = 113 }
 0x35f   :  { %883 = vsyncpa [#allocation3], 1 }
 0x360   :  { %885 = vsyncpa [#allocation3 + $0x1], 1 }
 0x361   :  { %886 = vsyncpa [#allocation6], 1 }
 0x362   :  { %887 = vsyncpa [#allocation9], 1 }
 0x363   :  { %888 = vsyncpa [#allocation4], 1 }
 0x364   :  { %890 = vsyncpa [#allocation4 + $0x1], 1 }

</bundles_post_ra>
